<compile_context>
chip_gen: v7x
topology: tpu7x:2x2x1
jax: 0.10.0
libtpu: 0.0.40
codegen_flags: <defaults>
</compile_context>

<pallas_src>
import functools

import jax
import jax.numpy as jnp
from jax.experimental import pallas as pl
from jax.experimental.pallas import tpu as pltpu


_TARGET_TILE_ELEMS = 1 << 20          # ~4 MiB f32 per tile on the tiled path


def _cdiv(a, b):
    return (a + b - 1) // b


def _round_up(a, b):
    return _cdiv(a, b) * b


@functools.lru_cache(maxsize=1)
def _vmem_limit_bytes():
    """Scoped-VMEM limit to request: 3/4 of physical VMEM, capped at 96 MiB.
    v5e/v6e (128 MiB physical) -> 96 MiB; v7x (64 MiB per TC) -> 48 MiB."""
    try:
        cap = int(pltpu.get_tpu_info().vmem_capacity_bytes)
    except Exception:
        cap = 64 << 20                # conservative (v7x-sized) fallback
    return int(min(cap * 3 // 4, 96 << 20))


def _pick_tiles(R, L):
    """Large rectangular tiles: rows multiple of 32 (int8 native sublane tile),
    cols multiple of 128 (lane tile), targeting ~_TARGET_TILE_ELEMS per tile."""
    tr0 = min(_round_up(R, 32), 512)
    tc = min(_round_up(L, 128),
             _round_up(max(_TARGET_TILE_ELEMS // tr0, 128), 128))
    tr = min(_round_up(R, 32),
             _round_up(max(_TARGET_TILE_ELEMS // tc, 32), 32))
    return tr, tc


# ----------------------------- fused path (slab resident in VMEM) -----------------

def _fused_kernel(x_ref, q_ref, stats_ref, *, bits):
    """Whole slab resident in VMEM: min/max + quantize with a single HBM read of x."""
    x = x_ref[...].astype(jnp.float32)
    mn = jnp.min(x)
    mx = jnp.max(x)
    levels = float(2 ** bits - 1)
    offset = float(2 ** (bits - 1))
    step = (mx - mn) / levels
    safe_step = jnp.where(step == 0.0, 1.0, step)      # constant-tensor guard
    inv_step = 1.0 / safe_step
    bias = -mn * inv_step - offset                     # fused affine: x*inv + bias
    q = jnp.clip(jnp.round(x * inv_step + bias), -offset, offset - 1.0)
    q_ref[...] = q.astype(jnp.int8)
    lane = jax.lax.broadcasted_iota(jnp.int32, (1, 2), 1)
    stats_ref[...] = jnp.where(lane == 0, mn, step).astype(jnp.float32)


# ----------------------------- two-pass tiled path ---------------------------------

def _minmax_partials_kernel(x_ref, part_ref, *, R, L, TR, TC):
    """Per-tile min/max partials.  Every grid step is independent, so both axes are
    "parallel" (v7x megacore shards pass 1).  Ragged edge tiles are masked in-register
    (no wrapper-side padding)."""
    i = pl.program_id(0)
    j = pl.program_id(1)
    x = x_ref[...]
    # min/max are exact in the source dtype; keep f32/bf16 native, cast anything else.
    if x.dtype != jnp.float32 and x.dtype != jnp.bfloat16:
        x = x.astype(jnp.float32)

    mask_rows = (R % TR) != 0
    mask_cols = (L % TC) != 0
    if mask_rows or mask_cols:
        valid = None
        if mask_rows:
            rows = i * TR + jax.lax.broadcasted_iota(jnp.int32, (TR, TC), 0)
            valid = rows < R
        if mask_cols:
            cols = j * TC + jax.lax.broadcasted_iota(jnp.int32, (TR, TC), 1)
            cvalid = cols < L
            valid = cvalid if valid is None else jnp.logical_and(valid, cvalid)
        x_for_min = jnp.where(valid, x, jnp.inf)
        x_for_max = jnp.where(valid, x, -jnp.inf)
    else:
        x_for_min = x
        x_for_max = x

    mn = jnp.min(x_for_min).astype(jnp.float32)
    mx = jnp.max(x_for_max).astype(jnp.float32)
    # Lane-dense (1, 2, 128) partial slab: row 0 = tile min, row 1 = tile max.
    row = jax.lax.broadcasted_iota(jnp.int32, (1, 2, 128), 1)
    part_ref[...] = jnp.where(row == 0, mn, mx)


def _quantize_kernel(stats_ref, x_ref, q_ref, *, bits):
    """q = round(x * inv_step + bias); scalars read from SMEM; edge tiles write
    partial output blocks (out-of-range lanes are dropped by the writeback DMA)."""
    inv_step = stats_ref[0, 2]
    bias = stats_ref[0, 3]
    offset = float(2 ** (bits - 1))
    x = x_ref[...].astype(jnp.float32)
    q = jnp.clip(jnp.round(x * inv_step + bias), -offset, offset - 1.0)
    q_ref[...] = q.astype(jnp.int8)


# ----------------------------- wrapper ---------------------------------------------

def qsend_forward(x, bits=8, *, force_tiled=False, tile_rows=None, tile_cols=None):
    """Forward of QSendGPU: returns x unchanged plus the quantized payload
    (the tensors the PyTorch code would dist.isend to send_rank)."""
    assert bits <= 8, "only bits<=8 (int8) payload implemented"
    # TODO(synk): the 8<bits<=16 path (int16 quantize viewed as int8) is not implemented.

    N, C, H, W = x.shape
    R, L = N * C, H * W
    x2 = x.reshape(R, L)                  # free view; native dtype kept (cast in-kernel)
    levels = float(2 ** bits - 1)
    offset = float(2 ** (bits - 1))
    vmem_limit = _vmem_limit_bytes()

    # Fused single-kernel path: x DMA'd from HBM exactly once, whole slab resident.
    # Budget ~ (native + f32 working + int8 out) bytes/elem against half the limit.
    elem_bytes = jnp.dtype(x.dtype).itemsize
    fused_footprint = R * L * (elem_bytes + 8 + 1)
    if (not force_tiled) and fused_footprint <= vmem_limit // 2:
        q2, stats = pl.pallas_call(
            functools.partial(_fused_kernel, bits=bits),
            out_shape=(jax.ShapeDtypeStruct((R, L), jnp.int8),
                       jax.ShapeDtypeStruct((1, 2), jnp.float32)),
            compiler_params=pltpu.CompilerParams(vmem_limit_bytes=vmem_limit),
        )(x2)
        q = q2.reshape(N, C, H, W)
        return x, (q, stats[0, 0], stats[0, 1])

    # ------------------------- tiled two-pass path -------------------------
    if tile_rows is None or tile_cols is None:
        TR, TC = _pick_tiles(R, L)
    else:
        assert tile_rows % 32 == 0 and tile_cols % 128 == 0
        TR, TC = tile_rows, tile_cols
    G0, G1 = _cdiv(R, TR), _cdiv(L, TC)
    grid = (G0, G1)

    # Pass 1: independent per-tile min/max partials (both grid axes "parallel").
    partials = pl.pallas_call(
        functools.partial(_minmax_partials_kernel, R=R, L=L, TR=TR, TC=TC),
        out_shape=jax.ShapeDtypeStruct((G0 * G1, 2, 128), jnp.float32),
        grid=grid,
        in_specs=[pl.BlockSpec((TR, TC), lambda i, j: (i, j))],
        out_specs=pl.BlockSpec((1, 2, 128),
                               lambda i, j, G1=G1: (i * G1 + j, 0, 0)),
        compiler_params=pltpu.CompilerParams(
            dimension_semantics=("parallel", "parallel"),
            vmem_limit_bytes=vmem_limit),
    )(x2)

    # Tiny scalar epilogue (G0*G1 values) in plain XLA.
    mn = jnp.min(partials[:, 0, 0])
    mx = jnp.max(partials[:, 1, 0])
    step = (mx - mn) / levels
    safe_step = jnp.where(step == 0.0, jnp.float32(1.0), step)   # constant-tensor guard
    inv_step = 1.0 / safe_step
    bias = -mn * inv_step - offset
    stats = jnp.stack([mn, step, inv_step, bias]).astype(jnp.float32).reshape(1, 4)

    # Pass 2: elementwise quantize with SMEM scalars; ragged edge tiles write
    # partial blocks directly into the (R, L) int8 output (no pad / slice round-trip).
    q2 = pl.pallas_call(
        functools.partial(_quantize_kernel, bits=bits),
        out_shape=jax.ShapeDtypeStruct((R, L), jnp.int8),
        grid=grid,
        in_specs=[pl.BlockSpec(memory_space=pltpu.MemorySpace.SMEM),
                  pl.BlockSpec((TR, TC), lambda i, j: (i, j))],
        out_specs=pl.BlockSpec((TR, TC), lambda i, j: (i, j)),
        compiler_params=pltpu.CompilerParams(
            dimension_semantics=("parallel", "parallel"),
            vmem_limit_bytes=vmem_limit),
    )(stats, x2)

    q = q2.reshape(N, C, H, W)
    # TODO(synk): torch.distributed.isend of (q, min, step) has no single-chip Pallas
    # equivalent; the quantized payload is returned to the caller instead.
    return x, (q, mn, step)


class QSendLayerGPU:
    """JAX/Pallas analogue of the PyTorch QSendLayerGPU module."""

    def __init__(self, bits, send_rank, rank, sparse=False):
        self.bits = bits
        self.send_rank = send_rank
        self.rank = rank
        self.sparse = sparse

    def __call__(self, x):
        return qsend_forward(x, bits=self.bits)


# ----------------------------- tests ------------------------------------------------

if __name__ == "__main__":
    def reference_div(x, bits=8):
        """Torch-spec reference: round((x - min) / step - 2^(bits-1))."""
        mn = x.min()
        mx = x.max()
        st = (mx - mn) / float(2 ** bits - 1)
        q = jnp.round((x - mn) / st - float(2 ** (bits - 1))).astype(jnp.int8)
        return q, mn, st

    def check(x, out, q, minv, step, bits=8):
        ref_q, ref_mn, ref_st = reference_div(x, bits)
        assert jnp.array_equal(out, x), "forward must return input unchanged"
        assert jnp.allclose(minv, ref_mn), "min mismatch"
        assert jnp.allclose(step, ref_st), "step mismatch"
        # Reciprocal/fused-affine form may differ from the division form by <=1 code.
        diff = jnp.max(jnp.abs(q.astype(jnp.int32) - ref_q.astype(jnp.int32)))
        assert diff <= 1, "quantized payload differs by more than 1 code"
        # Dequantization round-trip must stay within one quantization step.
        deq = (q.astype(jnp.float32) + float(2 ** (bits - 1))) * step + minv
        assert jnp.max(jnp.abs(deq - x)) <= 0.75 * step, "dequant round-trip error"

    key = jax.random.PRNGKey(0)
    k0, k1, k2, k3 = jax.random.split(key, 4)

    # ---- primary test: fused single-read path, module-consistent shape ----
    x = jax.random.normal(k0, (2, 4, 16, 16), dtype=jnp.float32)
    layer = QSendLayerGPU(bits=8, send_rank=1, rank=0)
    out, (q, minv, step) = layer(x)
    jax.block_until_ready((out, q, minv, step))
    check(x, out, q, minv, step)

    # ---- tiled path: ragged rows AND ragged cols, single row-tile ----
    x1 = jax.random.normal(k1, (3, 5, 16, 20), dtype=jnp.float32)   # R=15, L=320
    out1, (q1, mn1, st1) = qsend_forward(
        x1, bits=8, force_tiled=True, tile_rows=32, tile_cols=128)
    jax.block_until_ready((out1, q1, mn1, st1))
    check(x1, out1, q1, mn1, st1)

    # ---- tiled path: multi-tile grid (2x3) with ragged cols ----
    x2 = jax.random.normal(k2, (4, 16, 16, 20), dtype=jnp.float32)  # R=64, L=320
    out2, (q2, mn2, st2) = qsend_forward(
        x2, bits=8, force_tiled=True, tile_rows=32, tile_cols=128)
    jax.block_until_ready((out2, q2, mn2, st2))
    check(x2, out2, q2, mn2, st2)

    # ---- tiled path with auto-picked tiles (ragged lane edge) ----
    x3 = jax.random.normal(k3, (8, 8, 60, 36), dtype=jnp.float32)   # R=64, L=2160
    out3, (q3, mn3, st3) = qsend_forward(x3, bits=8, force_tiled=True)
    jax.block_until_ready((out3, q3, mn3, st3))
    check(x3, out3, q3, mn3, st3)

    print("KERNEL_OK")
</pallas_src>

<mosaic_0001>
module attributes {stable_mosaic.version = 11 : i64} {
  func.func @_fused_kernel(%arg0: memref<8x256xf32, #tpu.memory_space<vmem>>, %arg1: memref<8x256xi8, #tpu.memory_space<vmem>>, %arg2: memref<1x2xf32, #tpu.memory_space<vmem>>) attributes {dimension_semantics = [], scalar_prefetch = 0 : i64, scratch_operands = 0 : i64, tpu.core_type = #tpu.core_type<tc>} {
    %c0 = arith.constant 0 : index
    %c0_0 = arith.constant 0 : index
    %0 = vector.load %arg0[%c0, %c0_0] : memref<8x256xf32, #tpu.memory_space<vmem>>, vector<8x256xf32>
    %1 = vector.shape_cast %0 : vector<8x256xf32> to vector<1x8x256xf32>
    %cst = arith.constant dense<0x7F800000> : vector<1xf32>
    %2 = vector.multi_reduction <minimumf>, %1, %cst [1, 2] : vector<1x8x256xf32> to vector<1xf32>
    %3 = vector.shape_cast %2 : vector<1xf32> to vector<1x1x1xf32>
    %4 = vector.extract %3[0, 0, 0] : f32 from vector<1x1x1xf32>
    %5 = vector.shape_cast %0 : vector<8x256xf32> to vector<1x8x256xf32>
    %cst_1 = arith.constant dense<0xFF800000> : vector<1xf32>
    %6 = vector.multi_reduction <maximumf>, %5, %cst_1 [1, 2] : vector<1x8x256xf32> to vector<1xf32>
    %7 = vector.shape_cast %6 : vector<1xf32> to vector<1x1x1xf32>
    %8 = vector.extract %7[0, 0, 0] : f32 from vector<1x1x1xf32>
    %9 = arith.subf %8, %4 : f32
    %cst_2 = arith.constant 2.550000e+02 : f32
    %10 = arith.divf %9, %cst_2 : f32
    %cst_3 = arith.constant 0.000000e+00 : f32
    %11 = arith.cmpf oeq, %10, %cst_3 : f32
    %cst_4 = arith.constant 1.000000e+00 : f32
    %12 = arith.select %11, %cst_4, %10 : f32
    %cst_5 = arith.constant 1.000000e+00 : f32
    %13 = arith.divf %cst_5, %12 : f32
    %cst_6 = arith.constant 0.000000e+00 : f32
    %14 = arith.subf %cst_6, %4 : f32
    %15 = arith.mulf %14, %13 : f32
    %cst_7 = arith.constant 1.280000e+02 : f32
    %16 = arith.subf %15, %cst_7 : f32
    %17 = vector.broadcast %13 : f32 to vector<8x256xf32>
    %18 = arith.mulf %0, %17 : vector<8x256xf32>
    %19 = vector.broadcast %16 : f32 to vector<8x256xf32>
    %20 = arith.addf %18, %19 : vector<8x256xf32>
    %21 = math.roundeven %20 : vector<8x256xf32>
    %cst_8 = arith.constant -1.280000e+02 : f32
    %cst_9 = arith.constant 1.270000e+02 : f32
    %22 = vector.broadcast %cst_8 : f32 to vector<8x256xf32>
    %23 = arith.maximumf %22, %21 : vector<8x256xf32>
    %24 = vector.broadcast %cst_9 : f32 to vector<8x256xf32>
    %25 = arith.minimumf %24, %23 : vector<8x256xf32>
    %26 = arith.fptosi %25 : vector<8x256xf32> to vector<8x256xi8>
    %c0_10 = arith.constant 0 : index
    %c0_11 = arith.constant 0 : index
    %27 = vector.load %arg1[%c0_10, %c0_11] : memref<8x256xi8, #tpu.memory_space<vmem>>, vector<8x256xi8>
    tpu.vector_store %arg1[%c0_10, %c0_11], %26 {strides = array<i32>} : memref<8x256xi8, #tpu.memory_space<vmem>>, vector<8x256xi8>,
    %28 = tpu.iota {dimensions = array<i32: 1>} : vector<1x2xi32>
    %c0_i32 = arith.constant 0 : i32
    %29 = vector.broadcast %c0_i32 : i32 to vector<1x2xi32>
    %30 = arith.cmpi eq, %28, %29 : vector<1x2xi32>
    %31 = vector.broadcast %4 : f32 to vector<1x2xf32>
    %32 = vector.broadcast %10 : f32 to vector<1x2xf32>
    %33 = arith.select %30, %31, %32 : vector<1x2xi1>, vector<1x2xf32>
    %c0_12 = arith.constant 0 : index
    %c0_13 = arith.constant 0 : index
    %34 = vector.load %arg2[%c0_12, %c0_13] : memref<1x2xf32, #tpu.memory_space<vmem>>, vector<1x2xf32>
    tpu.vector_store %arg2[%c0_12, %c0_13], %33 {strides = array<i32>} : memref<1x2xf32, #tpu.memory_space<vmem>>, vector<1x2xf32>,
    return
  }
}

</mosaic_0001>

<bundles_post_ra>
// kernel: tpu_custom_call.1
= control target key start
LH: loop header
LB: loop body
LE: loop exit
PB: predicated region body
PF: predicated region fallthrough
CT: control target
= control target key end

     0   :  { %8 = vsyncpa [#allocation3], 0  ;;  %s271_s0 = inlined_call_operand.hbm [shape: f32[8,256], index: 0, kind: input, shape index: {}]   ;;  %s272_s1 = inlined_call_operand.hbm [shape: s8[8,256], index: 1, kind: output, shape index: {0}]   ;;  %s273_s2 = inlined_call_operand.hbm [shape: f32[1,2], index: 2, kind: output, shape index: {1}]  }
   0x1   :  { %9 = vsyncpa [#allocation4], 0 }
   0x2   :  { %10 = vsyncpa [#allocation7], 0  ;;  %s212_s9 = smov [#allocation2]   ;;  %s140_s13 = scalar_lea.hbm %s271_s0, 256 }
   0x3   :  { %s17_s10 = sshll.u32 %s212_s9, 4  ;;  %p141_p0 = scmp.ne.s32.totalorder %s271_s0, %s140_s13  ;;  %s18_s10 = int_to_ptr.vmem [resolvable:$true] %s17_s10 }
   0x4   :  { %p144_p1 = scmp.lt.u32.totalorder %s140_s13, %s271_s0 }
   0x6   :  { %p146_p2 = pnand %p144_p1, %p141_p0 }
   0x8   :  { %149 = shalt.err (!%p146_p2)
}
   0x9   :  { %s150_s18 = scalar_lea.vmem %s18_s10, 256  ;;  %p155_p4 = scmp.lt.s32.totalorder %s18_s10, %s18_s10 }
   0xa   :  { %p151_p3 = scmp.ne.s32.totalorder %s18_s10, %s150_s18  ;;  %p156_p5 = scmp.lt.s32.totalorder %s150_s18, %s150_s18 }
   0xc   :  { %p157_p6 = por %p156_p5, %p155_p4 }
   0xe   :  { %p158_p7 = pnand %p157_p6, %p151_p3 }
  0x10   :  { %161 = shalt.err (!%p158_p7)
}
  0x11   :  { %20 = dma.hbm_to_vmem [thread:$0]  %s271_s0, 256, %s18_s10, [#allocation3]  }
  0x12   :  { %206 = dma.done.wait [#allocation3], 256  }
  0x13   :  { %207 = vsyncadd [#allocation3], 4294967040  ;;  %v24_v0 = vld [vmem:[#allocation2] sm:$0xff]  ;;  %v25_v1 = vld [vmem:[#allocation2 + $0x8] sm:$0xff]  ;;  %v89_v18 = vlaneseq  ;;  %s213_s23 = smov [#allocation6]   ;;  %vm95_vm1 = vcmask 8192  }
  0x14   :  { %v26_v2 = vmin.f32 %v24_v0, %v25_v1  ;;  %v36_v3 = vmax.f32 %v24_v0, %v25_v1  ;;  %s113_s24 = sshll.u32 %s213_s23, 4  ;;  %s114_s24 = int_to_ptr.vmem [resolvable:$true] %s113_s24 }
  0x15   :  { %v90_v19 = vand.u32 127, %v89_v18  ;;  %s162_s26 = scalar_lea.vmem %s114_s24, 16  ;;  %s166_s27 = scalar_lea.vmem %s114_s24, 32 }
  0x16   :  { %27 = vmin.xlane.f32.xlu0 %v26_v2  ;;  %p163_p9 = scmp.ne.s32.totalorder %s114_s24, %s162_s26  ;;  %p167_p10 = scmp.lt.s32.totalorder %s114_s24, %s114_s24 }
  0x17   :  { %vm91_vm0 = vcmp.eq.s32.totalorder %v90_v19, 0  ;;  %p168_p11 = scmp.lt.s32.totalorder %s166_s27, %s162_s26 }
  0x19   :  { %p169_p12 = por %p168_p11, %p167_p10 }
  0x1a   :  { %37 = vmax.xlane.f32.xlu0 %v36_v3 }
  0x1b   :  { %p170_p13 = pnand %p169_p12, %p163_p9 }
  0xa3   :  { %v28_v4 = vpop.xlane.xlu0 %27 }
  0xa4   :  { %v29_v5 = vrot.slane %v28_v4, 4 }
  0xa6   :  { %v30_v6 = vmin.f32 %v28_v4, %v29_v5 }
  0xa7   :  { %v38_v7 = vpop.xlane.xlu0 %37 }
  0xa8   :  { %v31_v8 = vrot.slane %v30_v6, 2  ;;  %v39_v9 = vrot.slane %v38_v7, 4 }
  0xaa   :  { %v40_v10 = vmax.f32 %v38_v7, %v39_v9  ;;  %v32_v11 = vmin.f32 %v30_v6, %v31_v8 }
  0xac   :  { %v41_v12 = vrot.slane %v40_v10, 2  ;;  %v33_v13 = vrot.slane %v32_v11, 1 }
  0xae   :  { %v42_v14 = vmax.f32 %v40_v10, %v41_v12  ;;  %v34_v15 = vmin.f32 %v32_v11, %v33_v13 }
  0xb0   :  { %127 = vpush %v34_v15  ;;  %v43_v16 = vrot.slane %v42_v14, 1 }
  0xb2   :  { %v44_v17 = vmax.f32 %v42_v14, %v43_v16 }
  0xb4   :  { %129 = vpush %v44_v17 }
  0xe1   :  { %s242_s0 = spop %127 }
  0xe2   :  { %v92_v20 = vstv %s242_s0 }
  0xe5   :  { %s130_s21 = spop %129 }
  0xe6   :  { %s46_s22 = ssub.f32 %s130_s21, %s242_s0 }
  0xe8   :  { %s49_s25 = smul.f32 0.003921569, %s46_s22 }
  0xea   :  { %p50_p8 = scmp.eq.f32.partialorder %s49_s25, 0.0  ;;  %v93_v21 = vstv %s49_s25 }
  0xeb   :  { %v94_v22 = vsel %vm91_vm0, %v92_v20, %v93_v21 }
  0xec   :  { %s275_s25 = smov (%p50_p8, %s49_s25), 1.0  ;;  %96 = vst.msk [vmem:[#allocation6] sm:$0x1] %vm95_vm1, %v94_v22 }
  0xed   :  { %173 = shalt.err (!%p170_p13)
}
  0xee   :  { %s174_s30 = scalar_lea.hbm %s273_s2, 16 }
  0xef   :  { %p175_p0 = scmp.ne.s32.totalorder %s273_s2, %s174_s30  ;;  %p178_p1 = scmp.lt.u32.totalorder %s174_s30, %s273_s2 }
  0xf1   :  { %p180_p2 = pnand %p178_p1, %p175_p0 }
  0xf3   :  { %183 = shalt.err (!%p180_p2)
}
  0xf4   :  { %116 = dma.vmem_to_hbm [thread:$0]  %s114_s24, 16, %s273_s2, [#allocation7]   ;;  %v52_v23 = vstv %s275_s25 }
  0xf5   :  { %138 = vrcp.f32 %v52_v23  ;;  %s55_s9 = ssub.f32 0.0, %s242_s0  ;;  %s214_s2 = smov [#allocation5]  }
  0xf6   :  { %s103_s13 = sshll.u32 %s214_s2, 4  ;;  %s104_s13 = int_to_ptr.vmem [resolvable:$true] %s103_s13 }
  0xf7   :  { %s184_s14 = scalar_lea.vmem %s104_s13, 64  ;;  %p189_p4 = scmp.lt.s32.totalorder %s104_s13, %s104_s13 }
  0xf8   :  { %p185_p3 = scmp.ne.s32.totalorder %s104_s13, %s184_s14  ;;  %p190_p5 = scmp.lt.s32.totalorder %s184_s14, %s184_s14 }
  0xfa   :  { %p191_p6 = por %p190_p5, %p189_p4 }
  0xfc   :  { %p192_p7 = pnand %p191_p6, %p185_p3 }
  0xff   :  { %v139_v24 = vpop.eup %138 }
 0x100   :  { %131 = vpush %v139_v24 }
 0x131   :  { %s132_s10 = spop %131 }
 0x132   :  { %s56_s11 = smul.f32 %s132_s10, %s55_s9  ;;  %v58_v25 = vstv %s132_s10 }
 0x133   :  { %v59_v26 = vmul.f32 %v58_v25, %v24_v0  ;;  %v60_v27 = vmul.f32 %v58_v25, %v25_v1 }
 0x134   :  { %s126_s12 = sadd.f32 -128.0, %s56_s11 }
 0x136   :  { %v61_v28 = vstv %s126_s12 }
 0x137   :  { %v62_v29 = vadd.f32 %v61_v28, %v59_v26  ;;  %v63_v30 = vadd.f32 %v61_v28, %v60_v27 }
 0x139   :  { %v133_v31 = vround.rtne.f32 %v62_v29  ;;  %v134_v32 = vround.rtne.f32 %v63_v30 }
 0x13b   :  { %v66_v33 = vmax.f32 %v133_v31, -128.0  ;;  %v67_v34 = vmax.f32 %v134_v32, -128.0 }
 0x13d   :  { %v68_v35 = vmin.f32 %v66_v33, 127.0  ;;  %v69_v36 = vmin.f32 %v67_v34, 127.0 }
 0x13f   :  { %v70_v37 = vtrunc.f32 %v68_v35  ;;  %v71_v38 = vtrunc.f32 %v69_v36 }
 0x141   :  { %v72_v39 = vpack.c.f32.eXmY %v70_v37, %v70_v37, 312  ;;  %v78_v40 = vpack.c.f32.eXmY %v71_v38, %v71_v38, 312 }
 0x143   :  { %v76_v41 = vpack.c.b8 %v72_v39, %v72_v39  ;;  %v82_v42 = vpack.c.b8 %v78_v40, %v78_v40 }
 0x145   :  { %v84_v43 = vunpack.c.0.s8 %v76_v41  ;;  %v85_v44 = vunpack.c.0.s8 %v82_v42 }
 0x147   :  { %v86_v45 = vpack.c.b16 %v85_v44, %v84_v43 }
 0x149   :  { %v87_v46 = vpack.c.b8 %v86_v45, %v86_v45 }
 0x14b   :  { %88 = vst [vmem:[#allocation5] sm:$0xf] %v87_v46 }
 0x14c   :  { %195 = shalt.err (!%p192_p7)
}
 0x14d   :  { %s196_s17 = scalar_lea.hbm %s272_s1, 64 }
 0x14e   :  { %p197_p8 = scmp.ne.s32.totalorder %s272_s1, %s196_s17  ;;  %p200_p9 = scmp.lt.u32.totalorder %s196_s17, %s272_s1 }
 0x150   :  { %p202_p10 = pnand %p200_p9, %p197_p8 }
 0x152   :  { %205 = shalt.err (!%p202_p10)
}
 0x153   :  { %106 = dma.vmem_to_hbm [thread:$0]  %s104_s13, 64, %s272_s1, [#allocation4]  }
 0x154   :  { %208 = dma.done.wait [#allocation4], 64  }
 0x155   :  { %209 = vsyncadd [#allocation4], 4294967232 }
 0x156   :  { %210 = dma.done.wait [#allocation7], 16  }
 0x157   :  { %211 = vsyncadd [#allocation7], 4294967280 }
 0x158   :  { %123 = vsyncpa [#allocation3], 1 }
 0x159   :  { %124 = vsyncpa [#allocation4], 1 }
 0x15a   :  { %125 = vsyncpa [#allocation7], 1 }

</bundles_post_ra>
